<compile_context>
chip_gen: v7x
topology: tpu7x:2x2x1
jax: 0.10.0
libtpu: 0.0.40
codegen_flags: <defaults>
</compile_context>

<pallas_src>
import functools

import jax
import jax.numpy as jnp
from jax.experimental import pallas as pl
from jax.experimental.pallas import tpu as pltpu

_LANE = 128


def _round_up(n, m):
    return ((n + m - 1) // m) * m


# ----------------------------------------------------------------------------
# Kernel: fused 5-layer bias-free MLP on one batch tile (all operands in VMEM)
# ----------------------------------------------------------------------------
def _encoder_kernel(x_ref, w1_ref, w2_ref, w3_ref, w4_ref, w5_ref, out_ref, *,
                    act_dtype):
    cdt = w1_ref.dtype                      # MXU operand dtype (bf16)
    # x arrives at its HBM dtype (f32); cast on the VPU, hidden under DMA/MXU.
    h = x_ref[...].astype(cdt)
    for w_ref in (w1_ref, w2_ref, w3_ref, w4_ref):
        acc = jnp.dot(h, w_ref[...], preferred_element_type=jnp.float32)
        # tanh in bf16 on chips with a bf16 EUP/VPU (v6e/v7x), f32 on v5e.
        h = jnp.tanh(acc.astype(act_dtype)).astype(cdt)
    out_ref[...] = jnp.dot(h, w5_ref[...],
                           preferred_element_type=jnp.float32
                           ).astype(out_ref.dtype)


# ----------------------------------------------------------------------------
# One-time parameter prep: transpose to [in, out], pad all dims to 128, cast
# ----------------------------------------------------------------------------
def prepare_encoder_params(weights, *, compute_dtype=jnp.bfloat16):
    """weights: PyTorch-style [out, in] f32 matrices W1..W5 (bias-free).

    Returns lane-padded [padded_in, padded_out] matrices in `compute_dtype`.
    Zero-padding every matmul dim to a multiple of 128 is exact because
    bias=False and tanh(0)=0 (padded rows/cols only produce/consume zeros).
    """
    prepped = []
    for w in weights:
        o, i = w.shape
        wt = jnp.asarray(w, jnp.float32).T                       # [in, out]
        wt = jnp.pad(wt, ((0, _round_up(i, _LANE) - i),
                          (0, _round_up(o, _LANE) - o)))
        prepped.append(wt.astype(compute_dtype))
    return prepped


def _default_act_dtype():
    """bf16 tanh only on chips with a bf16 VPU/EUP (v6e / v7x); f32 otherwise."""
    try:
        kind = jax.devices()[0].device_kind.lower()
    except Exception:
        return jnp.float32
    return jnp.bfloat16 if any(t in kind for t in ("v6", "v7", "7x")) else jnp.float32


def _choose_tile_b(B, per_row_bytes, resident_bytes, *, budget_bytes=24 << 20):
    """Largest batch tile (multiple of 16, <=1024) whose double-buffered x/out
    blocks plus intermediates fit the VMEM budget alongside resident weights,
    while guaranteeing >=2 grid steps for large batches (so the "parallel"
    batch axis can shard across both v7x TensorCores)."""
    avail = max(budget_bytes - resident_bytes, 1 << 20)
    tile = int(avail // max(per_row_bytes, 1))
    tile = max(16, min(1024, (tile // 16) * 16))
    if B <= tile:
        if B >= 32:                       # >=2 grid steps for megacore sharding
            return max(16, ((B // 2) // 16) * 16)
        return B                          # tiny batch: single full-extent block
    return tile


# ----------------------------------------------------------------------------
# Forward wrapper
# ----------------------------------------------------------------------------
def encoder_forward(x, prepped_wts, *, latent_sim_dim, latent_augment_dim,
                    augment_latent_space, act_dtype=None):
    """x: (B, ...) array (flattened like nn.Flatten(1,-1)).
    prepped_wts: output of prepare_encoder_params (lane-padded, [in, out])."""
    if act_dtype is None:
        act_dtype = _default_act_dtype()
    output_dim = latent_sim_dim + (latent_augment_dim if augment_latent_space
                                   else 0)

    B = x.shape[0]
    x_flat = x.reshape(B, -1)             # Flatten(1,-1); keep source dtype (f32)
    padded_in = prepped_wts[0].shape[0]
    padded_out = prepped_wts[-1].shape[1]
    in_feat = x_flat.shape[1]
    if in_feat > padded_in:
        raise ValueError(f"x has {in_feat} features, weights expect <= {padded_in}")
    if in_feat < padded_in:
        # Exact (W1's padded rows are zero).  Doing this once upstream at
        # data-prep time avoids this per-call pass entirely.
        x_flat = jnp.pad(x_flat, ((0, 0), (0, padded_in - in_feat)))

    x_itemsize = x_flat.dtype.itemsize
    w_itemsize = prepped_wts[0].dtype.itemsize
    weight_bytes = sum(int(w.size) * w_itemsize for w in prepped_wts)
    hidden_cols = sum(int(w.shape[1]) for w in prepped_wts[:-1])
    per_row = (2 * padded_in * x_itemsize      # x block, double-buffered
               + 2 * padded_out * 2            # bf16 out block, double-buffered
               + hidden_cols * 6)              # f32 accumulators + bf16 activations
    # Budget conservatively assumes double-buffered weights (covers fallback).
    tile_b = _choose_tile_b(B, per_row, 2 * weight_bytes)
    grid = (pl.cdiv(B, tile_b),)

    vmem_need = 2 * weight_bytes + tile_b * per_row
    vmem_limit = int(min(max(vmem_need + (4 << 20), 16 << 20), 32 << 20))

    flops = 2 * B * sum(int(w.shape[0]) * int(w.shape[1]) for w in prepped_wts)
    transcendentals = B * hidden_cols
    bytes_accessed = (int(x_flat.size) * x_itemsize + weight_bytes
                      + B * padded_out * 2)

    kernel = functools.partial(_encoder_kernel, act_dtype=act_dtype)

    def call(single_buffer_weights):
        if single_buffer_weights:
            w_specs = [pl.BlockSpec(w.shape, lambda i: (0, 0),
                                    pipeline_mode=pl.Buffered(1))
                       for w in prepped_wts]
        else:
            w_specs = [pl.BlockSpec(w.shape, lambda i: (0, 0))
                       for w in prepped_wts]
        return pl.pallas_call(
            kernel,
            out_shape=jax.ShapeDtypeStruct((B, padded_out), jnp.bfloat16),
            grid=grid,
            in_specs=[pl.BlockSpec((tile_b, padded_in), lambda i: (i, 0))]
                     + w_specs,
            out_specs=pl.BlockSpec((tile_b, padded_out), lambda i: (i, 0)),
            compiler_params=pltpu.CompilerParams(
                dimension_semantics=("parallel",),
                vmem_limit_bytes=vmem_limit),
            cost_estimate=pl.CostEstimate(flops=flops,
                                          transcendentals=transcendentals,
                                          bytes_accessed=bytes_accessed),
        )(x_flat, *prepped_wts)

    try:
        out = call(True)      # resident weights single-buffered
    except Exception:         # older JAX without Buffered(1): double-buffered
        out = call(False)

    out = out[:, :output_dim].astype(jnp.float32)
    if augment_latent_space:
        return {'latent_sim': out[..., :latent_sim_dim],
                'latent_augment': out[..., latent_sim_dim:
                                      latent_sim_dim + latent_augment_dim]}
    return {'latent_sim': out}


# ----------------------------------------------------------------------------
# Deterministic init mimicking PyTorch Linear U(-1/sqrt(fan_in), 1/sqrt(fan_in))
# ----------------------------------------------------------------------------
def init_encoder_weights(key, in_features, output_dim):
    dims = [in_features, 200, 100, 50, 10, output_dim]
    weights = []
    for i in range(len(dims) - 1):
        key, sub = jax.random.split(key)
        bound = 1.0 / (dims[i] ** 0.5)
        w = jax.random.uniform(sub, (dims[i + 1], dims[i]),
                               dtype=jnp.float32, minval=-bound, maxval=bound)
        weights.append(w)
    return weights


def _reference(x, weights):
    """Plain-JAX f32 reference of the same bias-free MLP."""
    h = x.reshape(x.shape[0], -1)
    for w in weights[:-1]:
        h = jnp.tanh(h @ w.T)
    return h @ weights[-1].T


if __name__ == "__main__":
    latent_sim_dim = 3
    latent_augment_dim = 2
    augment_latent_space = True
    output_dim = latent_sim_dim + latent_augment_dim

    key = jax.random.PRNGKey(0)
    kx, kw, kx2 = jax.random.split(key, 3)

    # Small example: x [batch=2, channels=4, features=8] -> in_features=32
    x_small = jax.random.normal(kx, (2, 4, 8), dtype=jnp.float32)
    in_features = 4 * 8
    weights = init_encoder_weights(kw, in_features, output_dim)

    # One-time weight prep (transpose + lane-padding + bf16 cast), hoisted out
    # of the forward path.
    prepped = prepare_encoder_params(weights, compute_dtype=jnp.bfloat16)

    fwd = functools.partial(
        encoder_forward,
        latent_sim_dim=latent_sim_dim,
        latent_augment_dim=latent_augment_dim,
        augment_latent_space=augment_latent_space,
    )

    # bf16 MXU operands / activations bound accuracy to ~1e-2 relative; the
    # tolerance below reflects that (see review correctness notes).
    ATOL = 5e-2

    # --- tiny batch (single grid step, full-extent block) ---
    out_small = fwd(x_small, prepped)
    jax.block_until_ready(out_small)
    ref_small = _reference(x_small, weights)
    assert out_small['latent_sim'].shape == (2, latent_sim_dim)
    assert out_small['latent_augment'].shape == (2, latent_augment_dim)
    assert jnp.allclose(out_small['latent_sim'],
                        ref_small[..., :latent_sim_dim], atol=ATOL)
    assert jnp.allclose(out_small['latent_augment'],
                        ref_small[..., latent_sim_dim:], atol=ATOL)

    # --- larger batch: exercises the multi-step "parallel" batch grid ---
    x_large = jax.random.normal(kx2, (1024, 4, 8), dtype=jnp.float32)
    out_large = fwd(x_large, prepped)
    jax.block_until_ready(out_large)
    ref_large = _reference(x_large, weights)
    assert out_large['latent_sim'].shape == (1024, latent_sim_dim)
    assert out_large['latent_augment'].shape == (1024, latent_augment_dim)
    assert jnp.allclose(out_large['latent_sim'],
                        ref_large[..., :latent_sim_dim], atol=ATOL)
    assert jnp.allclose(out_large['latent_augment'],
                        ref_large[..., latent_sim_dim:], atol=ATOL)

    print("KERNEL_OK")
</pallas_src>

<mosaic_0001>
module attributes {stable_mosaic.version = 11 : i64} {
  func.func @_encoder_kernel(%arg0: i32, %arg1: memref<2x128xf32, #tpu.memory_space<vmem>>, %arg2: memref<128x256xbf16, #tpu.memory_space<vmem>>, %arg3: memref<256x128xbf16, #tpu.memory_space<vmem>>, %arg4: memref<128x128xbf16, #tpu.memory_space<vmem>>, %arg5: memref<128x128xbf16, #tpu.memory_space<vmem>>, %arg6: memref<128x128xbf16, #tpu.memory_space<vmem>>, %arg7: memref<2x128xbf16, #tpu.memory_space<vmem>>) attributes {dimension_semantics = [#tpu.dimension_semantics<parallel>], iteration_bounds = array<i64: 1>, scalar_prefetch = 0 : i64, scratch_operands = 0 : i64, tpu.core_type = #tpu.core_type<tc>, window_params = [{transform_indices = @transform_0, window_bounds = array<i64: 2, 128>}, {pipeline_mode = #tpu.pipeline_mode<synchronous>, transform_indices = @transform_1, window_bounds = array<i64: 128, 256>}, {pipeline_mode = #tpu.pipeline_mode<synchronous>, transform_indices = @transform_2, window_bounds = array<i64: 256, 128>}, {pipeline_mode = #tpu.pipeline_mode<synchronous>, transform_indices = @transform_3, window_bounds = array<i64: 128, 128>}, {pipeline_mode = #tpu.pipeline_mode<synchronous>, transform_indices = @transform_4, window_bounds = array<i64: 128, 128>}, {pipeline_mode = #tpu.pipeline_mode<synchronous>, transform_indices = @transform_5, window_bounds = array<i64: 128, 128>}, {transform_indices = @transform_6, window_bounds = array<i64: 2, 128>}]} {
    %c0 = arith.constant 0 : index
    %c0_0 = arith.constant 0 : index
    %0 = vector.load %arg1[%c0, %c0_0] : memref<2x128xf32, #tpu.memory_space<vmem>>, vector<2x128xf32>
    %1 = arith.truncf %0 : vector<2x128xf32> to vector<2x128xbf16>
    %c0_1 = arith.constant 0 : index
    %c0_2 = arith.constant 0 : index
    %2 = vector.load %arg2[%c0_1, %c0_2] : memref<128x256xbf16, #tpu.memory_space<vmem>>, vector<128x256xbf16>
    %cst = arith.constant dense<0.000000e+00> : vector<2x256xf32>
    %3 = tpu.matmul %1, %2, %cst {dimension_numbers = #tpu.dot_dimension_numbers<[1], [0], [0], [1], [0, 0, 1, 1], [], []>} : vector<2x128xbf16>, vector<128x256xbf16>, vector<2x256xf32> -> vector<2x256xf32>
    %4 = math.tanh %3 : vector<2x256xf32>
    %5 = arith.truncf %4 : vector<2x256xf32> to vector<2x256xbf16>
    %c0_3 = arith.constant 0 : index
    %c0_4 = arith.constant 0 : index
    %6 = vector.load %arg3[%c0_3, %c0_4] : memref<256x128xbf16, #tpu.memory_space<vmem>>, vector<256x128xbf16>
    %cst_5 = arith.constant dense<0.000000e+00> : vector<2x128xf32>
    %7 = tpu.matmul %5, %6, %cst_5 {dimension_numbers = #tpu.dot_dimension_numbers<[1], [0], [0], [1], [0, 0, 1, 1], [], []>} : vector<2x256xbf16>, vector<256x128xbf16>, vector<2x128xf32> -> vector<2x128xf32>
    %8 = math.tanh %7 : vector<2x128xf32>
    %9 = arith.truncf %8 : vector<2x128xf32> to vector<2x128xbf16>
    %c0_6 = arith.constant 0 : index
    %c0_7 = arith.constant 0 : index
    %10 = vector.load %arg4[%c0_6, %c0_7] : memref<128x128xbf16, #tpu.memory_space<vmem>>, vector<128x128xbf16>
    %cst_8 = arith.constant dense<0.000000e+00> : vector<2x128xf32>
    %11 = tpu.matmul %9, %10, %cst_8 {dimension_numbers = #tpu.dot_dimension_numbers<[1], [0], [0], [1], [0, 0, 1, 1], [], []>} : vector<2x128xbf16>, vector<128x128xbf16>, vector<2x128xf32> -> vector<2x128xf32>
    %12 = math.tanh %11 : vector<2x128xf32>
    %13 = arith.truncf %12 : vector<2x128xf32> to vector<2x128xbf16>
    %c0_9 = arith.constant 0 : index
    %c0_10 = arith.constant 0 : index
    %14 = vector.load %arg5[%c0_9, %c0_10] : memref<128x128xbf16, #tpu.memory_space<vmem>>, vector<128x128xbf16>
    %cst_11 = arith.constant dense<0.000000e+00> : vector<2x128xf32>
    %15 = tpu.matmul %13, %14, %cst_11 {dimension_numbers = #tpu.dot_dimension_numbers<[1], [0], [0], [1], [0, 0, 1, 1], [], []>} : vector<2x128xbf16>, vector<128x128xbf16>, vector<2x128xf32> -> vector<2x128xf32>
    %16 = math.tanh %15 : vector<2x128xf32>
    %17 = arith.truncf %16 : vector<2x128xf32> to vector<2x128xbf16>
    %c0_12 = arith.constant 0 : index
    %c0_13 = arith.constant 0 : index
    %18 = vector.load %arg6[%c0_12, %c0_13] : memref<128x128xbf16, #tpu.memory_space<vmem>>, vector<128x128xbf16>
    %cst_14 = arith.constant dense<0.000000e+00> : vector<2x128xf32>
    %19 = tpu.matmul %17, %18, %cst_14 {dimension_numbers = #tpu.dot_dimension_numbers<[1], [0], [0], [1], [0, 0, 1, 1], [], []>} : vector<2x128xbf16>, vector<128x128xbf16>, vector<2x128xf32> -> vector<2x128xf32>
    %20 = arith.truncf %19 : vector<2x128xf32> to vector<2x128xbf16>
    %c0_15 = arith.constant 0 : index
    %c0_16 = arith.constant 0 : index
    %21 = vector.load %arg7[%c0_15, %c0_16] : memref<2x128xbf16, #tpu.memory_space<vmem>>, vector<2x128xbf16>
    tpu.vector_store %arg7[%c0_15, %c0_16], %20 {strides = array<i32>} : memref<2x128xbf16, #tpu.memory_space<vmem>>, vector<2x128xbf16>,
    return
  }
  func.func @transform_0(%arg0: i32) -> (i32, i32) {
    %c0_i32 = arith.constant 0 : i32
    %c0_i32_0 = arith.constant 0 : i32
    return %arg0, %c0_i32 : i32, i32
  }
  func.func @transform_1(%arg0: i32) -> (i32, i32) {
    %c0_i32 = arith.constant 0 : i32
    %c0_i32_0 = arith.constant 0 : i32
    %c0_i32_1 = arith.constant 0 : i32
    return %c0_i32, %c0_i32_0 : i32, i32
  }
  func.func @transform_2(%arg0: i32) -> (i32, i32) {
    %c0_i32 = arith.constant 0 : i32
    %c0_i32_0 = arith.constant 0 : i32
    %c0_i32_1 = arith.constant 0 : i32
    return %c0_i32, %c0_i32_0 : i32, i32
  }
  func.func @transform_3(%arg0: i32) -> (i32, i32) {
    %c0_i32 = arith.constant 0 : i32
    %c0_i32_0 = arith.constant 0 : i32
    %c0_i32_1 = arith.constant 0 : i32
    return %c0_i32, %c0_i32_0 : i32, i32
  }
  func.func @transform_4(%arg0: i32) -> (i32, i32) {
    %c0_i32 = arith.constant 0 : i32
    %c0_i32_0 = arith.constant 0 : i32
    %c0_i32_1 = arith.constant 0 : i32
    return %c0_i32, %c0_i32_0 : i32, i32
  }
  func.func @transform_5(%arg0: i32) -> (i32, i32) {
    %c0_i32 = arith.constant 0 : i32
    %c0_i32_0 = arith.constant 0 : i32
    %c0_i32_1 = arith.constant 0 : i32
    return %c0_i32, %c0_i32_0 : i32, i32
  }
  func.func @transform_6(%arg0: i32) -> (i32, i32) {
    %c0_i32 = arith.constant 0 : i32
    %c0_i32_0 = arith.constant 0 : i32
    return %arg0, %c0_i32 : i32, i32
  }
}

module attributes {stable_mosaic.version = 11 : i64} {
  func.func @_encoder_kernel(%arg0: i32, %arg1: memref<2x128xf32, #tpu.memory_space<vmem>>, %arg2: memref<128x256xbf16, #tpu.memory_space<vmem>>, %arg3: memref<256x128xbf16, #tpu.memory_space<vmem>>, %arg4: memref<128x128xbf16, #tpu.memory_space<vmem>>, %arg5: memref<128x128xbf16, #tpu.memory_space<vmem>>, %arg6: memref<128x128xbf16, #tpu.memory_space<vmem>>, %arg7: memref<2x128xbf16, #tpu.memory_space<vmem>>) attributes {dimension_semantics = [#tpu.dimension_semantics<parallel>], iteration_bounds = array<i64: 1>, scalar_prefetch = 0 : i64, scratch_operands = 0 : i64, tpu.core_type = #tpu.core_type<tc>, window_params = [{transform_indices = @transform_0, window_bounds = array<i64: 2, 128>}, {pipeline_mode = #tpu.pipeline_mode<synchronous>, transform_indices = @transform_1, window_bounds = array<i64: 128, 256>}, {pipeline_mode = #tpu.pipeline_mode<synchronous>, transform_indices = @transform_2, window_bounds = array<i64: 256, 128>}, {pipeline_mode = #tpu.pipeline_mode<synchronous>, transform_indices = @transform_3, window_bounds = array<i64: 128, 128>}, {pipeline_mode = #tpu.pipeline_mode<synchronous>, transform_indices = @transform_4, window_bounds = array<i64: 128, 128>}, {pipeline_mode = #tpu.pipeline_mode<synchronous>, transform_indices = @transform_5, window_bounds = array<i64: 128, 128>}, {transform_indices = @transform_6, window_bounds = array<i64: 2, 128>}]} {
    %c0 = arith.constant 0 : index
    %c0_0 = arith.constant 0 : index
    %0 = vector.load %arg1[%c0, %c0_0] : memref<2x128xf32, #tpu.memory_space<vmem>>, vector<2x128xf32>
    %1 = arith.truncf %0 : vector<2x128xf32> to vector<2x128xbf16>
    %c0_1 = arith.constant 0 : index
    %c0_2 = arith.constant 0 : index
    %2 = vector.load %arg2[%c0_1, %c0_2] : memref<128x256xbf16, #tpu.memory_space<vmem>>, vector<128x256xbf16>
    %cst = arith.constant dense<0.000000e+00> : vector<2x256xf32>
    %3 = tpu.matmul %1, %2, %cst {dimension_numbers = #tpu.dot_dimension_numbers<[1], [0], [0], [1], [0, 0, 1, 1], [], []>} : vector<2x128xbf16>, vector<128x256xbf16>, vector<2x256xf32> -> vector<2x256xf32>
    %4 = math.tanh %3 : vector<2x256xf32>
    %5 = arith.truncf %4 : vector<2x256xf32> to vector<2x256xbf16>
    %c0_3 = arith.constant 0 : index
    %c0_4 = arith.constant 0 : index
    %6 = vector.load %arg3[%c0_3, %c0_4] : memref<256x128xbf16, #tpu.memory_space<vmem>>, vector<256x128xbf16>
    %cst_5 = arith.constant dense<0.000000e+00> : vector<2x128xf32>
    %7 = tpu.matmul %5, %6, %cst_5 {dimension_numbers = #tpu.dot_dimension_numbers<[1], [0], [0], [1], [0, 0, 1, 1], [], []>} : vector<2x256xbf16>, vector<256x128xbf16>, vector<2x128xf32> -> vector<2x128xf32>
    %8 = math.tanh %7 : vector<2x128xf32>
    %9 = arith.truncf %8 : vector<2x128xf32> to vector<2x128xbf16>
    %c0_6 = arith.constant 0 : index
    %c0_7 = arith.constant 0 : index
    %10 = vector.load %arg4[%c0_6, %c0_7] : memref<128x128xbf16, #tpu.memory_space<vmem>>, vector<128x128xbf16>
    %cst_8 = arith.constant dense<0.000000e+00> : vector<2x128xf32>
    %11 = tpu.matmul %9, %10, %cst_8 {dimension_numbers = #tpu.dot_dimension_numbers<[1], [0], [0], [1], [0, 0, 1, 1], [], []>} : vector<2x128xbf16>, vector<128x128xbf16>, vector<2x128xf32> -> vector<2x128xf32>
    %12 = math.tanh %11 : vector<2x128xf32>
    %13 = arith.truncf %12 : vector<2x128xf32> to vector<2x128xbf16>
    %c0_9 = arith.constant 0 : index
    %c0_10 = arith.constant 0 : index
    %14 = vector.load %arg5[%c0_9, %c0_10] : memref<128x128xbf16, #tpu.memory_space<vmem>>, vector<128x128xbf16>
    %cst_11 = arith.constant dense<0.000000e+00> : vector<2x128xf32>
    %15 = tpu.matmul %13, %14, %cst_11 {dimension_numbers = #tpu.dot_dimension_numbers<[1], [0], [0], [1], [0, 0, 1, 1], [], []>} : vector<2x128xbf16>, vector<128x128xbf16>, vector<2x128xf32> -> vector<2x128xf32>
    %16 = math.tanh %15 : vector<2x128xf32>
    %17 = arith.truncf %16 : vector<2x128xf32> to vector<2x128xbf16>
    %c0_12 = arith.constant 0 : index
    %c0_13 = arith.constant 0 : index
    %18 = vector.load %arg6[%c0_12, %c0_13] : memref<128x128xbf16, #tpu.memory_space<vmem>>, vector<128x128xbf16>
    %cst_14 = arith.constant dense<0.000000e+00> : vector<2x128xf32>
    %19 = tpu.matmul %17, %18, %cst_14 {dimension_numbers = #tpu.dot_dimension_numbers<[1], [0], [0], [1], [0, 0, 1, 1], [], []>} : vector<2x128xbf16>, vector<128x128xbf16>, vector<2x128xf32> -> vector<2x128xf32>
    %20 = arith.truncf %19 : vector<2x128xf32> to vector<2x128xbf16>
    %c0_15 = arith.constant 0 : index
    %c0_16 = arith.constant 0 : index
    %21 = vector.load %arg7[%c0_15, %c0_16] : memref<2x128xbf16, #tpu.memory_space<vmem>>, vector<2x128xbf16>
    tpu.vector_store %arg7[%c0_15, %c0_16], %20 {strides = array<i32>} : memref<2x128xbf16, #tpu.memory_space<vmem>>, vector<2x128xbf16>,
    return
  }
  func.func @transform_0(%arg0: i32) -> (i32, i32) {
    %c0_i32 = arith.constant 0 : i32
    %c0_i32_0 = arith.constant 0 : i32
    return %arg0, %c0_i32 : i32, i32
  }
  func.func @transform_1(%arg0: i32) -> (i32, i32) {
    %c0_i32 = arith.constant 0 : i32
    %c0_i32_0 = arith.constant 0 : i32
    %c0_i32_1 = arith.constant 0 : i32
    return %c0_i32, %c0_i32_0 : i32, i32
  }
  func.func @transform_2(%arg0: i32) -> (i32, i32) {
    %c0_i32 = arith.constant 0 : i32
    %c0_i32_0 = arith.constant 0 : i32
    %c0_i32_1 = arith.constant 0 : i32
    return %c0_i32, %c0_i32_0 : i32, i32
  }
  func.func @transform_3(%arg0: i32) -> (i32, i32) {
    %c0_i32 = arith.constant 0 : i32
    %c0_i32_0 = arith.constant 0 : i32
    %c0_i32_1 = arith.constant 0 : i32
    return %c0_i32, %c0_i32_0 : i32, i32
  }
  func.func @transform_4(%arg0: i32) -> (i32, i32) {
    %c0_i32 = arith.constant 0 : i32
    %c0_i32_0 = arith.constant 0 : i32
    %c0_i32_1 = arith.constant 0 : i32
    return %c0_i32, %c0_i32_0 : i32, i32
  }
  func.func @transform_5(%arg0: i32) -> (i32, i32) {
    %c0_i32 = arith.constant 0 : i32
    %c0_i32_0 = arith.constant 0 : i32
    %c0_i32_1 = arith.constant 0 : i32
    return %c0_i32, %c0_i32_0 : i32, i32
  }
  func.func @transform_6(%arg0: i32) -> (i32, i32) {
    %c0_i32 = arith.constant 0 : i32
    %c0_i32_0 = arith.constant 0 : i32
    return %arg0, %c0_i32 : i32, i32
  }
}

</mosaic_0001>

<bundles_post_ra>
// kernel: tpu_custom_call.1
= control target key start
LH: loop header
LB: loop body
LE: loop exit
PB: predicated region body
PF: predicated region fallthrough
CT: control target
= control target key end

     0   :  { %11 = vsyncpa [#allocation3], 0  ;;  %s1346_s0 = inlined_call_operand.hbm [shape: f32[2,128], index: 0, kind: input, shape index: {}]   ;;  %s1347_s1 = inlined_call_operand.hbm [shape: bf16[128,256], index: 1, kind: input, shape index: {}]   ;;  %s1348_s2 = inlined_call_operand.hbm [shape: bf16[256,128], index: 2, kind: input, shape index: {}]   ;;  %s1349_s3 = inlined_call_operand.hbm [shape: bf16[128,128], index: 3, kind: input, shape index: {}]   ;;  %s1350_s4 = inlined_call_operand.hbm [shape: bf16[128,128], index: 4, kind: input, shape index: {}]   ;;  %s1351_s5 = inlined_call_operand.hbm [shape: bf16[128,128], index: 5, kind: input, shape index: {}]   ;;  %s1352_s6 = inlined_call_operand.hbm [shape: bf16[2,128], index: 6, kind: output, shape index: {}]  }
   0x1   :  { %12 = vsyncpa [#allocation6], 0 }
   0x2   :  { %13 = vsyncpa [#allocation9], 0 }
   0x3   :  { %14 = vsyncpa [#allocation12], 0 }
   0x4   :  { %15 = vsyncpa [#allocation4], 0  ;;  %s1171_s21 = smov [#allocation5]   ;;  %s1007_s25 = scalar_lea.hbm %s1347_s1, 2048 }
   0x5   :  { %s31_s22 = sshll.u32 %s1171_s21, 4  ;;  %p1008_p0 = scmp.ne.s32.totalorder %s1347_s1, %s1007_s25  ;;  %s32_s22 = int_to_ptr.vmem [resolvable:$true] %s31_s22 }
   0x6   :  { %p1011_p1 = scmp.lt.u32.totalorder %s1007_s25, %s1347_s1 }
   0x8   :  { %p1013_p2 = pnand %p1011_p1, %p1008_p0 }
   0xa   :  { %1016 = shalt.err (!%p1013_p2)
}
   0xb   :  { %s1017_s30 = scalar_lea.vmem %s32_s22, 2048  ;;  %p1022_p4 = scmp.lt.s32.totalorder %s32_s22, %s32_s22 }
   0xc   :  { %p1018_p3 = scmp.ne.s32.totalorder %s32_s22, %s1017_s30  ;;  %p1023_p5 = scmp.lt.s32.totalorder %s1017_s30, %s1017_s30 }
   0xe   :  { %p1024_p6 = por %p1023_p5, %p1022_p4 }
  0x10   :  { %p1025_p7 = pnand %p1024_p6, %p1018_p3 }
  0x12   :  { %1028 = shalt.err (!%p1025_p7)
}
  0x13   :  { %s1172_s7 = smov 128   ;;  %s1173_s8 = smov 8  }
  0x14   :  { %37 = dma.hbm_to_vmem [thread:$0]  %s1347_s1, 2048, %s32_s22, [#allocation6], %s1172_s7, %s1172_s7, %s1173_s8  }
  0x15   :  { %s1174_s11 = smov [#allocation8]   ;;  %s1175_s13 = smov [#allocation2]  }
  0x16   :  { %s55_s12 = sshll.u32 %s1174_s11, 4  ;;  %s22_s14 = sshll.u32 %s1175_s13, 4  ;;  %s56_s12 = int_to_ptr.vmem [resolvable:$true] %s55_s12  ;;  %s23_s14 = int_to_ptr.vmem [resolvable:$true] %s22_s14 }
  0x17   :  { %s1029_s17 = scalar_lea.hbm %s1349_s3, 1024 }
  0x18   :  { %p1030_p8 = scmp.ne.s32.totalorder %s1349_s3, %s1029_s17  ;;  %p1033_p9 = scmp.lt.u32.totalorder %s1029_s17, %s1349_s3 }
  0x1a   :  { %p1035_p10 = pnand %p1033_p9, %p1030_p8 }
  0x1c   :  { %1038 = shalt.err (!%p1035_p10)
}
  0x1d   :  { %s1039_s1 = scalar_lea.vmem %s56_s12, 1024  ;;  %p1044_p12 = scmp.lt.s32.totalorder %s56_s12, %s56_s12 }
  0x1e   :  { %p1040_p11 = scmp.ne.s32.totalorder %s56_s12, %s1039_s1  ;;  %p1045_p13 = scmp.lt.s32.totalorder %s1039_s1, %s1039_s1 }
  0x20   :  { %p1046_p0 = por %p1045_p13, %p1044_p12 }
  0x22   :  { %p1047_p1 = pnand %p1046_p0, %p1040_p11 }
  0x24   :  { %1050 = shalt.err (!%p1047_p1)
}
  0x25   :  { %s1176_s22 = smov 64   ;;  %s1177_s23 = smov 4  }
  0x26   :  { %61 = dma.hbm_to_vmem [thread:$0]  %s1349_s3, 1024, %s56_s12, [#allocation9], %s1176_s22, %s1176_s22, %s1177_s23  }
  0x27   :  { %s1051_s28 = scalar_lea.hbm %s1346_s0, 32 }
  0x28   :  { %p1052_p2 = scmp.ne.s32.totalorder %s1346_s0, %s1051_s28  ;;  %p1055_p3 = scmp.lt.u32.totalorder %s1051_s28, %s1346_s0 }
  0x2a   :  { %p1057_p4 = pnand %p1055_p3, %p1052_p2 }
  0x2c   :  { %1060 = shalt.err (!%p1057_p4)
}
  0x2d   :  { %s1061_s9 = scalar_lea.vmem %s23_s14, 32  ;;  %p1066_p6 = scmp.lt.s32.totalorder %s23_s14, %s23_s14 }
  0x2e   :  { %p1062_p5 = scmp.ne.s32.totalorder %s23_s14, %s1061_s9  ;;  %p1067_p7 = scmp.lt.s32.totalorder %s1061_s9, %s1061_s9 }
  0x30   :  { %p1068_p8 = por %p1067_p7, %p1066_p6 }
  0x32   :  { %p1069_p9 = pnand %p1068_p8, %p1062_p5 }
  0x34   :  { %1072 = shalt.err (!%p1069_p9)
}
  0x35   :  { %25 = dma.hbm_to_vmem [thread:$0]  %s1346_s0, 32, %s23_s14, [#allocation3]  }
  0x36   :  { %s1178_s11 = smov [#allocation7]   ;;  %s1179_s13 = smov [#allocation10]  }
  0x37   :  { %s43_s12 = sshll.u32 %s1178_s11, 4  ;;  %s67_s15 = sshll.u32 %s1179_s13, 4  ;;  %s44_s12 = int_to_ptr.vmem [resolvable:$true] %s43_s12  ;;  %s68_s15 = int_to_ptr.vmem [resolvable:$true] %s67_s15 }
  0x38   :  { %s1073_s18 = scalar_lea.hbm %s1348_s2, 2048 }
  0x39   :  { %p1074_p10 = scmp.ne.s32.totalorder %s1348_s2, %s1073_s18  ;;  %p1077_p11 = scmp.lt.u32.totalorder %s1073_s18, %s1348_s2 }
  0x3b   :  { %p1079_p12 = pnand %p1077_p11, %p1074_p10 }
  0x3d   :  { %1082 = shalt.err (!%p1079_p12)
}
  0x3e   :  { %s1083_s0 = scalar_lea.vmem %s44_s12, 2048  ;;  %p1088_p0 = scmp.lt.s32.totalorder %s44_s12, %s44_s12 }
  0x3f   :  { %p1084_p13 = scmp.ne.s32.totalorder %s44_s12, %s1083_s0  ;;  %p1089_p1 = scmp.lt.s32.totalorder %s1083_s0, %s1083_s0 }
  0x41   :  { %p1090_p2 = por %p1089_p1, %p1088_p0 }
  0x43   :  { %p1091_p3 = pnand %p1090_p2, %p1084_p13 }
  0x45   :  { %1094 = shalt.err (!%p1091_p3)
}
  0x46   :  { %49 = dma.hbm_to_vmem [thread:$0]  %s1348_s2, 2048, %s44_s12, [#allocation6], %s1176_s22, %s1176_s22, %s1177_s23  }
  0x47   :  { %s1095_s27 = scalar_lea.hbm %s1350_s4, 1024 }
  0x48   :  { %p1096_p4 = scmp.ne.s32.totalorder %s1350_s4, %s1095_s27  ;;  %p1099_p5 = scmp.lt.u32.totalorder %s1095_s27, %s1350_s4 }
  0x4a   :  { %p1101_p6 = pnand %p1099_p5, %p1096_p4 }
  0x4c   :  { %1104 = shalt.err (!%p1101_p6)
}
  0x4d   :  { %s1105_s8 = scalar_lea.vmem %s68_s15, 1024  ;;  %p1110_p8 = scmp.lt.s32.totalorder %s68_s15, %s68_s15 }
  0x4e   :  { %p1106_p7 = scmp.ne.s32.totalorder %s68_s15, %s1105_s8  ;;  %p1111_p9 = scmp.lt.s32.totalorder %s1105_s8, %s1105_s8 }
  0x50   :  { %p1112_p10 = por %p1111_p9, %p1110_p8 }
  0x52   :  { %p1113_p11 = pnand %p1112_p10, %p1106_p7 }
  0x54   :  { %1116 = shalt.err (!%p1113_p11)
}
  0x55   :  { %73 = dma.hbm_to_vmem [thread:$0]  %s1350_s4, 1024, %s68_s15, [#allocation9], %s1176_s22, %s1176_s22, %s1177_s23  }
  0x56   :  { %s1180_s3 = smov [#allocation11]   ;;  %s1117_s13 = scalar_lea.hbm %s1351_s5, 1024 }
  0x57   :  { %s79_s10 = sshll.u32 %s1180_s3, 4  ;;  %p1118_p12 = scmp.ne.s32.totalorder %s1351_s5, %s1117_s13  ;;  %s80_s10 = int_to_ptr.vmem [resolvable:$true] %s79_s10 }
  0x58   :  { %p1121_p13 = scmp.lt.u32.totalorder %s1117_s13, %s1351_s5 }
  0x5a   :  { %p1123_p0 = pnand %p1121_p13, %p1118_p12 }
  0x5c   :  { %1126 = shalt.err (!%p1123_p0)
}
  0x5d   :  { %s1127_s20 = scalar_lea.vmem %s80_s10, 1024  ;;  %p1132_p2 = scmp.lt.s32.totalorder %s80_s10, %s80_s10 }
  0x5e   :  { %p1128_p1 = scmp.ne.s32.totalorder %s80_s10, %s1127_s20  ;;  %p1133_p3 = scmp.lt.s32.totalorder %s1127_s20, %s1127_s20 }
  0x60   :  { %p1134_p4 = por %p1133_p3, %p1132_p2 }
  0x62   :  { %p1135_p5 = pnand %p1134_p4, %p1128_p1 }
  0x64   :  { %1138 = shalt.err (!%p1135_p5)
}
  0x65   :  { %85 = dma.hbm_to_vmem [thread:$0]  %s1351_s5, 1024, %s80_s10, [#allocation12], %s1176_s22, %s1176_s22, %s1177_s23  }
  0x66   :  { %1161 = dma.done.wait [#allocation3], 32  }
  0x67   :  { %1162 = vsyncadd [#allocation3], 4294967264 }
  0x68   :  { %1163 = dma.done.wait [#allocation6], 4096  }
  0x69   :  { %1164 = vsyncadd [#allocation6], 4294963200 }
  0x6a   :  { %1165 = dma.done.wait [#allocation9], 2048  }
  0x6b   :  { %1166 = vsyncadd [#allocation9], 4294965248 }
  0x6c   :  { %1167 = dma.done.wait [#allocation12], 1024  }
  0x6d   :  { %1168 = vsyncadd [#allocation12], 4294966272  ;;  %v1181_v0 = vmov 0   ;;  %v933_v1 = vld [vmem:[#allocation5 + $0x4] ss:$8 sps:$4 sm:$0xff]   ;;  %v961_v15 = vld [vmem:[#allocation7 + $0x50] sm:$0xff]  }
  0x6e   :  { %235 = vmatprep.mubr.bf16.mxu0 %v1181_v0  ;;  %v935_v2 = vld [vmem:[#allocation5] ss:$8 sps:$4 sm:$0xff]   ;;  %203 = vmatprep.subr.bf16.mxu0 %v933_v1  ;;  %v936_v3 = vld [vmem:[#allocation5 + $0x14] ss:$8 sps:$4 sm:$0xff]   ;;  %v938_v4 = vld [vmem:[#allocation5 + $0x10] ss:$8 sps:$4 sm:$0xff]  }
  0x6f   :  { %204 = vmatpush1.bf16.msra.mxu0 %v935_v2  ;;  %v939_v5 = vld [vmem:[#allocation5 + $0x24] ss:$8 sps:$4 sm:$0xff]   ;;  %v941_v6 = vld [vmem:[#allocation5 + $0x20] ss:$8 sps:$4 sm:$0xff]   ;;  %v942_v7 = vld [vmem:[#allocation5 + $0x34] ss:$8 sps:$4 sm:$0xff]  }
  0x70   :  { %205 = vmatprep.subr.bf16.mxu0 %v936_v3  ;;  %v944_v8 = vld [vmem:[#allocation5 + $0x30] ss:$8 sps:$4 sm:$0xff]   ;;  %v945_v9 = vld [vmem:[#allocation5 + $0x44] ss:$8 sps:$4 sm:$0xff]   ;;  %v947_v12 = vld [vmem:[#allocation5 + $0x40] ss:$8 sps:$4 sm:$0xff]  }
  0x71   :  { %v957_v10 = vld [vmem:[#allocation7 + $0x40] sm:$0xff]   ;;  %v959_v13 = vld [vmem:[#allocation7 + $0x48] sm:$0xff]   ;;  %v948_v16 = vld [vmem:[#allocation5 + $0x54] ss:$8 sps:$4 sm:$0xff]   ;;  %v1182_v36 = vmov 0.0   ;;  %vm1183_vm0 = vmmov 0  }
  0x72   :  { %v958_v11 = vld [vmem:[#allocation7] sm:$0xff]   ;;  %810 = vmatprep.subr.bf16.mxu1 %v957_v10  ;;  %v960_v14 = vld [vmem:[#allocation7 + $0x8] sm:$0xff]   ;;  %v950_v17 = vld [vmem:[#allocation5 + $0x50] ss:$8 sps:$4 sm:$0xff]   ;;  %s1184_s5 = smov [#allocation13]  }
  0x73   :  { %206 = vmatpush1.bf16.msra.mxu0 %v938_v4  ;;  %811 = vmatpush3.bf16.msra.mxu1 %v958_v11  ;;  %v962_v18 = vld [vmem:[#allocation7 + $0x10] sm:$0xff]   ;;  %v951_v19 = vld [vmem:[#allocation5 + $0x64] ss:$8 sps:$4 sm:$0xff]   ;;  %v963_v20 = vld [vmem:[#allocation7 + $0x58] sm:$0xff]   ;;  %s742_s22 = sshll.u32 %s1184_s5, 4  ;;  %s743_s22 = int_to_ptr.vmem [resolvable:$true] %s742_s22 }
  0x74   :  { %207 = vmatprep.subr.bf16.mxu0 %v939_v5  ;;  %812 = vmatprep.subr.bf16.mxu1 %v959_v13  ;;  %v964_v21 = vld [vmem:[#allocation7 + $0x18] sm:$0xff]   ;;  %v953_v22 = vld [vmem:[#allocation5 + $0x60] ss:$8 sps:$4 sm:$0xff]   ;;  %v969_v31 = vld [vmem:[#allocation7 + $0x70] sm:$0xff]   ;;  %s1139_s23 = scalar_lea.vmem %s743_s22, 16  ;;  %s1143_s21 = scalar_lea.vmem %s743_s22, 32 }
  0x75   :  { %v954_v23 = vld [vmem:[#allocation5 + $0x74] ss:$8 sps:$4 sm:$0xff]   ;;  %v956_v24 = vld [vmem:[#allocation5 + $0x70] ss:$8 sps:$4 sm:$0xff]   ;;  %v965_v27 = vld [vmem:[#allocation7 + $0x60] sm:$0xff]   ;;  %p1140_p6 = scmp.ne.s32.totalorder %s743_s22, %s1139_s23  ;;  %p1144_p7 = scmp.lt.s32.totalorder %s743_s22, %s743_s22 }
  0x76   :  { %v105_v25 = vld [vmem:[#allocation2] sm:$0x3]  ;;  %v966_v28 = vld [vmem:[#allocation7 + $0x20] sm:$0xff]   ;;  %v967_v29 = vld [vmem:[#allocation7 + $0x68] sm:$0xff]   ;;  %p1145_p8 = scmp.lt.s32.totalorder %s1143_s21, %s1139_s23 }
  0x77   :  { %208 = vmatpush1.bf16.msra.mxu0 %v941_v6  ;;  %813 = vmatpush3.bf16.msra.mxu1 %v960_v14  ;;  %v106_v26 = vpack.c.bf16 %v105_v25, %v105_v25  ;;  %v968_v30 = vld [vmem:[#allocation7 + $0x28] sm:$0xff]   ;;  %v970_v32 = vld [vmem:[#allocation7 + $0x30] sm:$0xff]   ;;  %v971_v33 = vld [vmem:[#allocation7 + $0x78] sm:$0xff]  }
  0x78   :  { %209 = vmatprep.subr.bf16.mxu0 %v942_v7  ;;  %814 = vmatprep.subr.bf16.mxu1 %v961_v15  ;;  %v972_v34 = vld [vmem:[#allocation7 + $0x38] sm:$0xff]   ;;  %v973_v35 = vld [vmem:[#allocation8] sm:$0xff]   ;;  %v974_v37 = vld [vmem:[#allocation8 + $0x8] sm:$0xff]   ;;  %p1146_p9 = por %p1145_p8, %p1144_p7 }
  0x79   :  { %v975_v38 = vld [vmem:[#allocation8 + $0x10] sm:$0xff]   ;;  %v976_v39 = vld [vmem:[#allocation8 + $0x18] sm:$0xff]   ;;  %v977_v48 = vld [vmem:[#allocation8 + $0x20] sm:$0xff]  }
  0x7a   :  { %v978_v49 = vld [vmem:[#allocation8 + $0x28] sm:$0xff]   ;;  %v979_v50 = vld [vmem:[#allocation8 + $0x30] sm:$0xff]   ;;  %v980_v51 = vld [vmem:[#allocation8 + $0x38] sm:$0xff]   ;;  %p1147_p10 = pnand %p1146_p9, %p1140_p6 }
  0x7b   :  { %210 = vmatpush1.bf16.msra.mxu0 %v944_v8  ;;  %815 = vmatpush3.bf16.msra.mxu1 %v962_v18  ;;  %v981_v52 = vld [vmem:[#allocation10] sm:$0xff]   ;;  %v982_v53 = vld [vmem:[#allocation10 + $0x8] sm:$0xff]   ;;  %v983_v54 = vld [vmem:[#allocation10 + $0x10] sm:$0xff]  }
  0x7c   :  { %211 = vmatprep.subr.bf16.mxu0 %v945_v9  ;;  %816 = vmatprep.subr.bf16.mxu1 %v963_v20  ;;  %v984_v55 = vld [vmem:[#allocation10 + $0x18] sm:$0xff]   ;;  %v985_v56 = vld [vmem:[#allocation10 + $0x20] sm:$0xff]   ;;  %v986_v0 = vld [vmem:[#allocation10 + $0x28] sm:$0xff]  }
  0x7d   :  { %v987_v1 = vld [vmem:[#allocation10 + $0x30] sm:$0xff]   ;;  %v988_v2 = vld [vmem:[#allocation10 + $0x38] sm:$0xff]   ;;  %v989_v3 = vld [vmem:[#allocation11] sm:$0xff]  }
  0x7e   :  { %v990_v4 = vld [vmem:[#allocation11 + $0x8] sm:$0xff]   ;;  %v991_v5 = vld [vmem:[#allocation11 + $0x10] sm:$0xff]   ;;  %v992_v6 = vld [vmem:[#allocation11 + $0x18] sm:$0xff]  }
  0x7f   :  { %212 = vmatpush1.bf16.msra.mxu0 %v947_v12  ;;  %817 = vmatpush3.bf16.msra.mxu1 %v964_v21  ;;  %v993_v7 = vld [vmem:[#allocation11 + $0x20] sm:$0xff]   ;;  %v994_v14 = vld [vmem:[#allocation11 + $0x28] sm:$0xff]   ;;  %v995_v15 = vld [vmem:[#allocation11 + $0x30] sm:$0xff]  }
  0x80   :  { %213 = vmatprep.subr.bf16.mxu0 %v948_v16  ;;  %818 = vmatprep.subr.bf16.mxu1 %v965_v27  ;;  %v996_v16 = vld [vmem:[#allocation11 + $0x38] sm:$0xff]  }
  0x83   :  { %214 = vmatpush1.bf16.msra.mxu0 %v950_v17  ;;  %819 = vmatpush3.bf16.msra.mxu1 %v966_v28 }
  0x84   :  { %215 = vmatprep.subr.bf16.mxu0 %v951_v19  ;;  %820 = vmatprep.subr.bf16.mxu1 %v967_v29 }
  0x87   :  { %216 = vmatpush1.bf16.msra.mxu0 %v953_v22  ;;  %821 = vmatpush3.bf16.msra.mxu1 %v968_v30 }
  0x88   :  { %217 = vmatprep.subr.bf16.mxu0 %v954_v23  ;;  %822 = vmatprep.subr.bf16.mxu1 %v969_v31 }
  0x8b   :  { %218 = vmatpush1.bf16.msra.mxu0 %v956_v24  ;;  %823 = vmatpush3.bf16.msra.mxu1 %v970_v32 }
  0x8c   :  { %824 = vmatprep.subr.bf16.mxu1 %v971_v33  ;;  %859 = vmatprep.subr.bf16.mxu0 %v1182_v36 }
  0x8e   :  { %236 = vmatmul.mubr.bf16.vlgmr.msra.gmra.mrb[0].mxu0 %v106_v26 }
  0x8f   :  { %825 = vmatpush3.bf16.msra.mxu1 %v972_v34  ;;  %860 = vmatpush3.bf16.msra.mxu0 %v973_v35 }
  0x90   :  { %879 = vmatprep.subr.bf16.mxu1 %v1182_v36  ;;  %861 = vmatprep.subr.bf16.mxu0 %v1182_v36 }
  0x91   :  { %875 = vmatprep.mubr.msk.bf16.mxu0 %vm1183_vm0, %v1182_v36 }
  0x93   :  { %862 = vmatpush3.bf16.msra.mxu0 %v974_v37 }
  0x94   :  { %863 = vmatprep.subr.bf16.mxu0 %v1182_v36 }
  0x97   :  { %864 = vmatpush3.bf16.msra.mxu0 %v975_v38 }
  0x98   :  { %865 = vmatprep.subr.bf16.mxu0 %v1182_v36 }
  0x9b   :  { %866 = vmatpush3.bf16.msra.mxu0 %v976_v39 }
  0x9c   :  { %867 = vmatprep.subr.bf16.mxu0 %v1182_v36 }
  0x9f   :  { %868 = vmatpush3.bf16.msra.mxu0 %v977_v48 }
  0xa0   :  { %869 = vmatprep.subr.bf16.mxu0 %v1182_v36 }
  0xa3   :  { %870 = vmatpush3.bf16.msra.mxu0 %v978_v49 }
  0xa4   :  { %871 = vmatprep.subr.bf16.mxu0 %v1182_v36 }
  0xa7   :  { %872 = vmatpush3.bf16.msra.mxu0 %v979_v50 }
  0xa8   :  { %873 = vmatprep.subr.bf16.mxu0 %v1182_v36 }
  0xab   :  { %874 = vmatpush3.bf16.msra.mxu0 %v980_v51 }
  0xac   :  { %899 = vmatprep.subr.bf16.mxu0 %v1182_v36 }
 0x161   :  { %v237_v40 = vpop.f32.mrb[0].mxu0 }
 0x162   :  { %997 = vtanh.f32 %v237_v40  ;;  %v239_v41 = vpop.f32.mrb[1].mxu0 }
 0x163   :  { %999 = vtanh.f32 %v239_v41  ;;  %v241_v42 = vpop.f32.mrb[2].mxu0 }
 0x164   :  { %v242_v43 = vpop.f32.mrb[3].mxu0 }
 0x16c   :  { %v998_v44 = vpop.eup %997 }
 0x16d   :  { %v1000_v45 = vpop.eup %999  ;;  %v246_v47 = vpack.c.bf16 %v998_v44, %v998_v44 }
 0x16e   :  { %v247_v46 = vpack.c.bf16 %v1000_v45, %v1000_v45 }
 0x170   :  { %408 = vmatprep.mubr.bf16.mxu1 %v247_v46 }
 0x171   :  { %409 = vmatmul.mubr.bf16.vlgmr.msra.gmra.mrb[0].mxu1 %v246_v47 }
 0x172   :  { %895 = vmatprep.mubr.msk.bf16.mxu1 %vm1183_vm0, %v1182_v36  ;;  %880 = vmatpush3.bf16.msra.mxu1 %v981_v52 }
 0x173   :  { %881 = vmatprep.subr.bf16.mxu1 %v1182_v36 }
 0x176   :  { %882 = vmatpush3.bf16.msra.mxu1 %v982_v53 }
 0x177   :  { %883 = vmatprep.subr.bf16.mxu1 %v1182_v36 }
 0x17a   :  { %884 = vmatpush3.bf16.msra.mxu1 %v983_v54 }
 0x17b   :  { %885 = vmatprep.subr.bf16.mxu1 %v1182_v36 }
 0x17e   :  { %886 = vmatpush3.bf16.msra.mxu1 %v984_v55 }
 0x17f   :  { %887 = vmatprep.subr.bf16.mxu1 %v1182_v36 }
 0x182   :  { %888 = vmatpush3.bf16.msra.mxu1 %v985_v56 }
 0x183   :  { %889 = vmatprep.subr.bf16.mxu1 %v1182_v36 }
 0x186   :  { %890 = vmatpush3.bf16.msra.mxu1 %v986_v0 }
 0x187   :  { %891 = vmatprep.subr.bf16.mxu1 %v1182_v36 }
 0x18a   :  { %892 = vmatpush3.bf16.msra.mxu1 %v987_v1 }
 0x18b   :  { %893 = vmatprep.subr.bf16.mxu1 %v1182_v36 }
 0x18e   :  { %894 = vmatpush3.bf16.msra.mxu1 %v988_v2 }
 0x244   :  { %v826_v57 = vpop.f32.mrb[0].mxu1 }
 0x245   :  { %v827_v58 = vpop.f32.mrb[1].mxu1 }
 0x246   :  { %v828_v59 = vadd.f32 %v827_v58, %v826_v57  ;;  %v829_v60 = vpop.f32.mrb[2].mxu1 }
 0x247   :  { %v830_v61 = vpop.f32.mrb[3].mxu1 }
 0x248   :  { %1001 = vtanh.f32 %v828_v59 }
 0x252   :  { %v1002_v62 = vpop.eup %1001 }
 0x253   :  { %v417_v63 = vpack.c.bf16 %v1002_v62, %v1002_v62 }
 0x255   :  { %876 = vmatmul.mubr.bf16.vlgmr.msra.gmra.mrb[4].mxu0 %v417_v63 }
 0x256   :  { %915 = vmatprep.mubr.msk.bf16.mxu0 %vm1183_vm0, %v1182_v36  ;;  %900 = vmatpush3.bf16.msra.mxu0 %v989_v3 }
 0x257   :  { %901 = vmatprep.subr.bf16.mxu0 %v1182_v36 }
 0x25a   :  { %902 = vmatpush3.bf16.msra.mxu0 %v990_v4 }
 0x25b   :  { %903 = vmatprep.subr.bf16.mxu0 %v1182_v36 }
 0x25e   :  { %904 = vmatpush3.bf16.msra.mxu0 %v991_v5 }
 0x25f   :  { %905 = vmatprep.subr.bf16.mxu0 %v1182_v36 }
 0x262   :  { %906 = vmatpush3.bf16.msra.mxu0 %v992_v6 }
 0x263   :  { %907 = vmatprep.subr.bf16.mxu0 %v1182_v36 }
 0x266   :  { %908 = vmatpush3.bf16.msra.mxu0 %v993_v7 }
 0x267   :  { %909 = vmatprep.subr.bf16.mxu0 %v1182_v36 }
 0x26a   :  { %910 = vmatpush3.bf16.msra.mxu0 %v994_v14 }
 0x26b   :  { %911 = vmatprep.subr.bf16.mxu0 %v1182_v36 }
 0x26e   :  { %912 = vmatpush3.bf16.msra.mxu0 %v995_v15 }
 0x26f   :  { %913 = vmatprep.subr.bf16.mxu0 %v1182_v36 }
 0x272   :  { %914 = vmatpush3.bf16.msra.mxu0 %v996_v16 }
 0x328   :  { %v516_v8 = vpop.f32.mrb[4].mxu0 }
 0x329   :  { %1003 = vtanh.f32 %v516_v8  ;;  %v877_v9 = vpop.f32.mrb[5].mxu0 }
 0x32a   :  { %v519_v10 = vpop.f32.mrb[6].mxu0 }
 0x32b   :  { %v878_v11 = vpop.f32.mrb[7].mxu0 }
 0x333   :  { %v1004_v12 = vpop.eup %1003 }
 0x334   :  { %v523_v13 = vpack.c.bf16 %v1004_v12, %v1004_v12 }
 0x336   :  { %896 = vmatmul.mubr.bf16.vlgmr.msra.gmra.mrb[4].mxu1 %v523_v13 }
 0x409   :  { %v622_v17 = vpop.f32.mrb[4].mxu1 }
 0x40a   :  { %1005 = vtanh.f32 %v622_v17  ;;  %v897_v18 = vpop.f32.mrb[5].mxu1 }
 0x40b   :  { %v625_v19 = vpop.f32.mrb[6].mxu1 }
 0x40c   :  { %v898_v20 = vpop.f32.mrb[7].mxu1 }
 0x414   :  { %v1006_v21 = vpop.eup %1005 }
 0x415   :  { %v629_v22 = vpack.c.bf16 %v1006_v21, %v1006_v21 }
 0x417   :  { %916 = vmatmul.mubr.bf16.vlgmr.msra.gmra.mrb[8].mxu0 %v629_v22 }
 0x4ea   :  { %v728_v23 = vpop.f32.mrb[8].mxu0 }
 0x4eb   :  { %v734_v24 = vpack.c.bf16 %v728_v23, %v728_v23  ;;  %v917_v25 = vpop.f32.mrb[9].mxu0 }
 0x4ec   :  { %v731_v26 = vpop.f32.mrb[10].mxu0 }
 0x4ed   :  { %735 = vst [vmem:[#allocation13] sm:$0x1] %v734_v24  ;;  %v918_v27 = vpop.f32.mrb[11].mxu0 }
 0x4ee   :  { %1150 = shalt.err (!%p1147_p10)
}
 0x4ef   :  { %s1151_s14 = scalar_lea.hbm %s1352_s6, 16 }
 0x4f0   :  { %p1152_p11 = scmp.ne.s32.totalorder %s1352_s6, %s1151_s14  ;;  %p1155_p12 = scmp.lt.u32.totalorder %s1151_s14, %s1352_s6 }
 0x4f2   :  { %p1157_p13 = pnand %p1155_p12, %p1152_p11 }
 0x4f4   :  { %1160 = shalt.err (!%p1157_p13)
}
 0x4f5   :  { %745 = dma.vmem_to_hbm [thread:$0]  %s743_s22, 16, %s1352_s6, [#allocation4]  }
 0x4f6   :  { %1169 = dma.done.wait [#allocation4], 16  }
 0x4f7   :  { %1170 = vsyncadd [#allocation4], 4294967280 }
 0x4f8   :  { %749 = vsyncpa [#allocation3], 1 }
 0x4f9   :  { %750 = vsyncpa [#allocation6], 1 }
 0x4fa   :  { %751 = vsyncpa [#allocation9], 1 }
 0x4fb   :  { %752 = vsyncpa [#allocation12], 1 }
 0x4fc   :  { %753 = vsyncpa [#allocation4], 1 }

// kernel: tpu_custom_call.1
= control target key start
LH: loop header
LB: loop body
LE: loop exit
PB: predicated region body
PF: predicated region fallthrough
CT: control target
= control target key end

     0   :  { %11 = vsyncpa [#allocation3], 0  ;;  %s1346_s0 = inlined_call_operand.hbm [shape: f32[2,128], index: 0, kind: input, shape index: {}]   ;;  %s1347_s1 = inlined_call_operand.hbm [shape: bf16[128,256], index: 1, kind: input, shape index: {}]   ;;  %s1348_s2 = inlined_call_operand.hbm [shape: bf16[256,128], index: 2, kind: input, shape index: {}]   ;;  %s1349_s3 = inlined_call_operand.hbm [shape: bf16[128,128], index: 3, kind: input, shape index: {}]   ;;  %s1350_s4 = inlined_call_operand.hbm [shape: bf16[128,128], index: 4, kind: input, shape index: {}]   ;;  %s1351_s5 = inlined_call_operand.hbm [shape: bf16[128,128], index: 5, kind: input, shape index: {}]   ;;  %s1352_s6 = inlined_call_operand.hbm [shape: bf16[2,128], index: 6, kind: output, shape index: {}]  }
   0x1   :  { %12 = vsyncpa [#allocation6], 0 }
   0x2   :  { %13 = vsyncpa [#allocation9], 0 }
   0x3   :  { %14 = vsyncpa [#allocation12], 0 }
   0x4   :  { %15 = vsyncpa [#allocation4], 0  ;;  %s1171_s21 = smov [#allocation5]   ;;  %s1007_s25 = scalar_lea.hbm %s1347_s1, 2048 }
   0x5   :  { %s31_s22 = sshll.u32 %s1171_s21, 4  ;;  %p1008_p0 = scmp.ne.s32.totalorder %s1347_s1, %s1007_s25  ;;  %s32_s22 = int_to_ptr.vmem [resolvable:$true] %s31_s22 }
   0x6   :  { %p1011_p1 = scmp.lt.u32.totalorder %s1007_s25, %s1347_s1 }
   0x8   :  { %p1013_p2 = pnand %p1011_p1, %p1008_p0 }
   0xa   :  { %1016 = shalt.err (!%p1013_p2)
}
   0xb   :  { %s1017_s30 = scalar_lea.vmem %s32_s22, 2048  ;;  %p1022_p4 = scmp.lt.s32.totalorder %s32_s22, %s32_s22 }
   0xc   :  { %p1018_p3 = scmp.ne.s32.totalorder %s32_s22, %s1017_s30  ;;  %p1023_p5 = scmp.lt.s32.totalorder %s1017_s30, %s1017_s30 }
   0xe   :  { %p1024_p6 = por %p1023_p5, %p1022_p4 }
  0x10   :  { %p1025_p7 = pnand %p1024_p6, %p1018_p3 }
  0x12   :  { %1028 = shalt.err (!%p1025_p7)
}
  0x13   :  { %s1172_s7 = smov 128   ;;  %s1173_s8 = smov 8  }
  0x14   :  { %37 = dma.hbm_to_vmem [thread:$0]  %s1347_s1, 2048, %s32_s22, [#allocation6], %s1172_s7, %s1172_s7, %s1173_s8  }
  0x15   :  { %s1174_s11 = smov [#allocation8]   ;;  %s1175_s13 = smov [#allocation2]  }
  0x16   :  { %s55_s12 = sshll.u32 %s1174_s11, 4  ;;  %s22_s14 = sshll.u32 %s1175_s13, 4  ;;  %s56_s12 = int_to_ptr.vmem [resolvable:$true] %s55_s12  ;;  %s23_s14 = int_to_ptr.vmem [resolvable:$true] %s22_s14 }
  0x17   :  { %s1029_s17 = scalar_lea.hbm %s1349_s3, 1024 }
  0x18   :  { %p1030_p8 = scmp.ne.s32.totalorder %s1349_s3, %s1029_s17  ;;  %p1033_p9 = scmp.lt.u32.totalorder %s1029_s17, %s1349_s3 }
  0x1a   :  { %p1035_p10 = pnand %p1033_p9, %p1030_p8 }
  0x1c   :  { %1038 = shalt.err (!%p1035_p10)
}
  0x1d   :  { %s1039_s1 = scalar_lea.vmem %s56_s12, 1024  ;;  %p1044_p12 = scmp.lt.s32.totalorder %s56_s12, %s56_s12 }
  0x1e   :  { %p1040_p11 = scmp.ne.s32.totalorder %s56_s12, %s1039_s1  ;;  %p1045_p13 = scmp.lt.s32.totalorder %s1039_s1, %s1039_s1 }
  0x20   :  { %p1046_p0 = por %p1045_p13, %p1044_p12 }
  0x22   :  { %p1047_p1 = pnand %p1046_p0, %p1040_p11 }
  0x24   :  { %1050 = shalt.err (!%p1047_p1)
}
  0x25   :  { %s1176_s22 = smov 64   ;;  %s1177_s23 = smov 4  }
  0x26   :  { %61 = dma.hbm_to_vmem [thread:$0]  %s1349_s3, 1024, %s56_s12, [#allocation9], %s1176_s22, %s1176_s22, %s1177_s23  }
  0x27   :  { %s1051_s28 = scalar_lea.hbm %s1346_s0, 32 }
  0x28   :  { %p1052_p2 = scmp.ne.s32.totalorder %s1346_s0, %s1051_s28  ;;  %p1055_p3 = scmp.lt.u32.totalorder %s1051_s28, %s1346_s0 }
  0x2a   :  { %p1057_p4 = pnand %p1055_p3, %p1052_p2 }
  0x2c   :  { %1060 = shalt.err (!%p1057_p4)
}
  0x2d   :  { %s1061_s9 = scalar_lea.vmem %s23_s14, 32  ;;  %p1066_p6 = scmp.lt.s32.totalorder %s23_s14, %s23_s14 }
  0x2e   :  { %p1062_p5 = scmp.ne.s32.totalorder %s23_s14, %s1061_s9  ;;  %p1067_p7 = scmp.lt.s32.totalorder %s1061_s9, %s1061_s9 }
  0x30   :  { %p1068_p8 = por %p1067_p7, %p1066_p6 }
  0x32   :  { %p1069_p9 = pnand %p1068_p8, %p1062_p5 }
  0x34   :  { %1072 = shalt.err (!%p1069_p9)
}
  0x35   :  { %25 = dma.hbm_to_vmem [thread:$0]  %s1346_s0, 32, %s23_s14, [#allocation3]  }
  0x36   :  { %s1178_s11 = smov [#allocation7]   ;;  %s1179_s13 = smov [#allocation10]  }
  0x37   :  { %s43_s12 = sshll.u32 %s1178_s11, 4  ;;  %s67_s15 = sshll.u32 %s1179_s13, 4  ;;  %s44_s12 = int_to_ptr.vmem [resolvable:$true] %s43_s12  ;;  %s68_s15 = int_to_ptr.vmem [resolvable:$true] %s67_s15 }
  0x38   :  { %s1073_s18 = scalar_lea.hbm %s1348_s2, 2048 }
  0x39   :  { %p1074_p10 = scmp.ne.s32.totalorder %s1348_s2, %s1073_s18  ;;  %p1077_p11 = scmp.lt.u32.totalorder %s1073_s18, %s1348_s2 }
  0x3b   :  { %p1079_p12 = pnand %p1077_p11, %p1074_p10 }
  0x3d   :  { %1082 = shalt.err (!%p1079_p12)
}
  0x3e   :  { %s1083_s0 = scalar_lea.vmem %s44_s12, 2048  ;;  %p1088_p0 = scmp.lt.s32.totalorder %s44_s12, %s44_s12 }
  0x3f   :  { %p1084_p13 = scmp.ne.s32.totalorder %s44_s12, %s1083_s0  ;;  %p1089_p1 = scmp.lt.s32.totalorder %s1083_s0, %s1083_s0 }
  0x41   :  { %p1090_p2 = por %p1089_p1, %p1088_p0 }
  0x43   :  { %p1091_p3 = pnand %p1090_p2, %p1084_p13 }
  0x45   :  { %1094 = shalt.err (!%p1091_p3)
}
  0x46   :  { %49 = dma.hbm_to_vmem [thread:$0]  %s1348_s2, 2048, %s44_s12, [#allocation6], %s1176_s22, %s1176_s22, %s1177_s23  }
  0x47   :  { %s1095_s27 = scalar_lea.hbm %s1350_s4, 1024 }
  0x48   :  { %p1096_p4 = scmp.ne.s32.totalorder %s1350_s4, %s1095_s27  ;;  %p1099_p5 = scmp.lt.u32.totalorder %s1095_s27, %s1350_s4 }
  0x4a   :  { %p1101_p6 = pnand %p1099_p5, %p1096_p4 }
  0x4c   :  { %1104 = shalt.err (!%p1101_p6)
}
  0x4d   :  { %s1105_s8 = scalar_lea.vmem %s68_s15, 1024  ;;  %p1110_p8 = scmp.lt.s32.totalorder %s68_s15, %s68_s15 }
  0x4e   :  { %p1106_p7 = scmp.ne.s32.totalorder %s68_s15, %s1105_s8  ;;  %p1111_p9 = scmp.lt.s32.totalorder %s1105_s8, %s1105_s8 }
  0x50   :  { %p1112_p10 = por %p1111_p9, %p1110_p8 }
  0x52   :  { %p1113_p11 = pnand %p1112_p10, %p1106_p7 }
  0x54   :  { %1116 = shalt.err (!%p1113_p11)
}
  0x55   :  { %73 = dma.hbm_to_vmem [thread:$0]  %s1350_s4, 1024, %s68_s15, [#allocation9], %s1176_s22, %s1176_s22, %s1177_s23  }
  0x56   :  { %s1180_s3 = smov [#allocation11]   ;;  %s1117_s13 = scalar_lea.hbm %s1351_s5, 1024 }
  0x57   :  { %s79_s10 = sshll.u32 %s1180_s3, 4  ;;  %p1118_p12 = scmp.ne.s32.totalorder %s1351_s5, %s1117_s13  ;;  %s80_s10 = int_to_ptr.vmem [resolvable:$true] %s79_s10 }
  0x58   :  { %p1121_p13 = scmp.lt.u32.totalorder %s1117_s13, %s1351_s5 }
  0x5a   :  { %p1123_p0 = pnand %p1121_p13, %p1118_p12 }
  0x5c   :  { %1126 = shalt.err (!%p1123_p0)
}
  0x5d   :  { %s1127_s20 = scalar_lea.vmem %s80_s10, 1024  ;;  %p1132_p2 = scmp.lt.s32.totalorder %s80_s10, %s80_s10 }
  0x5e   :  { %p1128_p1 = scmp.ne.s32.totalorder %s80_s10, %s1127_s20  ;;  %p1133_p3 = scmp.lt.s32.totalorder %s1127_s20, %s1127_s20 }
  0x60   :  { %p1134_p4 = por %p1133_p3, %p1132_p2 }
  0x62   :  { %p1135_p5 = pnand %p1134_p4, %p1128_p1 }
  0x64   :  { %1138 = shalt.err (!%p1135_p5)
}
  0x65   :  { %85 = dma.hbm_to_vmem [thread:$0]  %s1351_s5, 1024, %s80_s10, [#allocation12], %s1176_s22, %s1176_s22, %s1177_s23  }
  0x66   :  { %1161 = dma.done.wait [#allocation3], 32  }
  0x67   :  { %1162 = vsyncadd [#allocation3], 4294967264 }
  0x68   :  { %1163 = dma.done.wait [#allocation6], 4096  }
  0x69   :  { %1164 = vsyncadd [#allocation6], 4294963200 }
  0x6a   :  { %1165 = dma.done.wait [#allocation9], 2048  }
  0x6b   :  { %1166 = vsyncadd [#allocation9], 4294965248 }
  0x6c   :  { %1167 = dma.done.wait [#allocation12], 1024  }
  0x6d   :  { %1168 = vsyncadd [#allocation12], 4294966272  ;;  %v1181_v0 = vmov 0   ;;  %v933_v1 = vld [vmem:[#allocation5 + $0x4] ss:$8 sps:$4 sm:$0xff]   ;;  %v961_v15 = vld [vmem:[#allocation7 + $0x50] sm:$0xff]  }
  0x6e   :  { %235 = vmatprep.mubr.bf16.mxu0 %v1181_v0  ;;  %v935_v2 = vld [vmem:[#allocation5] ss:$8 sps:$4 sm:$0xff]   ;;  %203 = vmatprep.subr.bf16.mxu0 %v933_v1  ;;  %v936_v3 = vld [vmem:[#allocation5 + $0x14] ss:$8 sps:$4 sm:$0xff]   ;;  %v938_v4 = vld [vmem:[#allocation5 + $0x10] ss:$8 sps:$4 sm:$0xff]  }
  0x6f   :  { %204 = vmatpush1.bf16.msra.mxu0 %v935_v2  ;;  %v939_v5 = vld [vmem:[#allocation5 + $0x24] ss:$8 sps:$4 sm:$0xff]   ;;  %v941_v6 = vld [vmem:[#allocation5 + $0x20] ss:$8 sps:$4 sm:$0xff]   ;;  %v942_v7 = vld [vmem:[#allocation5 + $0x34] ss:$8 sps:$4 sm:$0xff]  }
  0x70   :  { %205 = vmatprep.subr.bf16.mxu0 %v936_v3  ;;  %v944_v8 = vld [vmem:[#allocation5 + $0x30] ss:$8 sps:$4 sm:$0xff]   ;;  %v945_v9 = vld [vmem:[#allocation5 + $0x44] ss:$8 sps:$4 sm:$0xff]   ;;  %v947_v12 = vld [vmem:[#allocation5 + $0x40] ss:$8 sps:$4 sm:$0xff]  }
  0x71   :  { %v957_v10 = vld [vmem:[#allocation7 + $0x40] sm:$0xff]   ;;  %v959_v13 = vld [vmem:[#allocation7 + $0x48] sm:$0xff]   ;;  %v948_v16 = vld [vmem:[#allocation5 + $0x54] ss:$8 sps:$4 sm:$0xff]   ;;  %v1182_v36 = vmov 0.0   ;;  %vm1183_vm0 = vmmov 0  }
  0x72   :  { %v958_v11 = vld [vmem:[#allocation7] sm:$0xff]   ;;  %810 = vmatprep.subr.bf16.mxu1 %v957_v10  ;;  %v960_v14 = vld [vmem:[#allocation7 + $0x8] sm:$0xff]   ;;  %v950_v17 = vld [vmem:[#allocation5 + $0x50] ss:$8 sps:$4 sm:$0xff]   ;;  %s1184_s5 = smov [#allocation13]  }
  0x73   :  { %206 = vmatpush1.bf16.msra.mxu0 %v938_v4  ;;  %811 = vmatpush3.bf16.msra.mxu1 %v958_v11  ;;  %v962_v18 = vld [vmem:[#allocation7 + $0x10] sm:$0xff]   ;;  %v951_v19 = vld [vmem:[#allocation5 + $0x64] ss:$8 sps:$4 sm:$0xff]   ;;  %v963_v20 = vld [vmem:[#allocation7 + $0x58] sm:$0xff]   ;;  %s742_s22 = sshll.u32 %s1184_s5, 4  ;;  %s743_s22 = int_to_ptr.vmem [resolvable:$true] %s742_s22 }
  0x74   :  { %207 = vmatprep.subr.bf16.mxu0 %v939_v5  ;;  %812 = vmatprep.subr.bf16.mxu1 %v959_v13  ;;  %v964_v21 = vld [vmem:[#allocation7 + $0x18] sm:$0xff]   ;;  %v953_v22 = vld [vmem:[#allocation5 + $0x60] ss:$8 sps:$4 sm:$0xff]   ;;  %v969_v31 = vld [vmem:[#allocation7 + $0x70] sm:$0xff]   ;;  %s1139_s23 = scalar_lea.vmem %s743_s22, 16  ;;  %s1143_s21 = scalar_lea.vmem %s743_s22, 32 }
  0x75   :  { %v954_v23 = vld [vmem:[#allocation5 + $0x74] ss:$8 sps:$4 sm:$0xff]   ;;  %v956_v24 = vld [vmem:[#allocation5 + $0x70] ss:$8 sps:$4 sm:$0xff]   ;;  %v965_v27 = vld [vmem:[#allocation7 + $0x60] sm:$0xff]   ;;  %p1140_p6 = scmp.ne.s32.totalorder %s743_s22, %s1139_s23  ;;  %p1144_p7 = scmp.lt.s32.totalorder %s743_s22, %s743_s22 }
  0x76   :  { %v105_v25 = vld [vmem:[#allocation2] sm:$0x3]  ;;  %v966_v28 = vld [vmem:[#allocation7 + $0x20] sm:$0xff]   ;;  %v967_v29 = vld [vmem:[#allocation7 + $0x68] sm:$0xff]   ;;  %p1145_p8 = scmp.lt.s32.totalorder %s1143_s21, %s1139_s23 }
  0x77   :  { %208 = vmatpush1.bf16.msra.mxu0 %v941_v6  ;;  %813 = vmatpush3.bf16.msra.mxu1 %v960_v14  ;;  %v106_v26 = vpack.c.bf16 %v105_v25, %v105_v25  ;;  %v968_v30 = vld [vmem:[#allocation7 + $0x28] sm:$0xff]   ;;  %v970_v32 = vld [vmem:[#allocation7 + $0x30] sm:$0xff]   ;;  %v971_v33 = vld [vmem:[#allocation7 + $0x78] sm:$0xff]  }
  0x78   :  { %209 = vmatprep.subr.bf16.mxu0 %v942_v7  ;;  %814 = vmatprep.subr.bf16.mxu1 %v961_v15  ;;  %v972_v34 = vld [vmem:[#allocation7 + $0x38] sm:$0xff]   ;;  %v973_v35 = vld [vmem:[#allocation8] sm:$0xff]   ;;  %v974_v37 = vld [vmem:[#allocation8 + $0x8] sm:$0xff]   ;;  %p1146_p9 = por %p1145_p8, %p1144_p7 }
  0x79   :  { %v975_v38 = vld [vmem:[#allocation8 + $0x10] sm:$0xff]   ;;  %v976_v39 = vld [vmem:[#allocation8 + $0x18] sm:$0xff]   ;;  %v977_v48 = vld [vmem:[#allocation8 + $0x20] sm:$0xff]  }
  0x7a   :  { %v978_v49 = vld [vmem:[#allocation8 + $0x28] sm:$0xff]   ;;  %v979_v50 = vld [vmem:[#allocation8 + $0x30] sm:$0xff]   ;;  %v980_v51 = vld [vmem:[#allocation8 + $0x38] sm:$0xff]   ;;  %p1147_p10 = pnand %p1146_p9, %p1140_p6 }
  0x7b   :  { %210 = vmatpush1.bf16.msra.mxu0 %v944_v8  ;;  %815 = vmatpush3.bf16.msra.mxu1 %v962_v18  ;;  %v981_v52 = vld [vmem:[#allocation10] sm:$0xff]   ;;  %v982_v53 = vld [vmem:[#allocation10 + $0x8] sm:$0xff]   ;;  %v983_v54 = vld [vmem:[#allocation10 + $0x10] sm:$0xff]  }
  0x7c   :  { %211 = vmatprep.subr.bf16.mxu0 %v945_v9  ;;  %816 = vmatprep.subr.bf16.mxu1 %v963_v20  ;;  %v984_v55 = vld [vmem:[#allocation10 + $0x18] sm:$0xff]   ;;  %v985_v56 = vld [vmem:[#allocation10 + $0x20] sm:$0xff]   ;;  %v986_v0 = vld [vmem:[#allocation10 + $0x28] sm:$0xff]  }
  0x7d   :  { %v987_v1 = vld [vmem:[#allocation10 + $0x30] sm:$0xff]   ;;  %v988_v2 = vld [vmem:[#allocation10 + $0x38] sm:$0xff]   ;;  %v989_v3 = vld [vmem:[#allocation11] sm:$0xff]  }
  0x7e   :  { %v990_v4 = vld [vmem:[#allocation11 + $0x8] sm:$0xff]   ;;  %v991_v5 = vld [vmem:[#allocation11 + $0x10] sm:$0xff]   ;;  %v992_v6 = vld [vmem:[#allocation11 + $0x18] sm:$0xff]  }
  0x7f   :  { %212 = vmatpush1.bf16.msra.mxu0 %v947_v12  ;;  %817 = vmatpush3.bf16.msra.mxu1 %v964_v21  ;;  %v993_v7 = vld [vmem:[#allocation11 + $0x20] sm:$0xff]   ;;  %v994_v14 = vld [vmem:[#allocation11 + $0x28] sm:$0xff]   ;;  %v995_v15 = vld [vmem:[#allocation11 + $0x30] sm:$0xff]  }
  0x80   :  { %213 = vmatprep.subr.bf16.mxu0 %v948_v16  ;;  %818 = vmatprep.subr.bf16.mxu1 %v965_v27  ;;  %v996_v16 = vld [vmem:[#allocation11 + $0x38] sm:$0xff]  }
  0x83   :  { %214 = vmatpush1.bf16.msra.mxu0 %v950_v17  ;;  %819 = vmatpush3.bf16.msra.mxu1 %v966_v28 }
  0x84   :  { %215 = vmatprep.subr.bf16.mxu0 %v951_v19  ;;  %820 = vmatprep.subr.bf16.mxu1 %v967_v29 }
  0x87   :  { %216 = vmatpush1.bf16.msra.mxu0 %v953_v22  ;;  %821 = vmatpush3.bf16.msra.mxu1 %v968_v30 }
  0x88   :  { %217 = vmatprep.subr.bf16.mxu0 %v954_v23  ;;  %822 = vmatprep.subr.bf16.mxu1 %v969_v31 }
  0x8b   :  { %218 = vmatpush1.bf16.msra.mxu0 %v956_v24  ;;  %823 = vmatpush3.bf16.msra.mxu1 %v970_v32 }
  0x8c   :  { %824 = vmatprep.subr.bf16.mxu1 %v971_v33  ;;  %859 = vmatprep.subr.bf16.mxu0 %v1182_v36 }
  0x8e   :  { %236 = vmatmul.mubr.bf16.vlgmr.msra.gmra.mrb[0].mxu0 %v106_v26 }
  0x8f   :  { %825 = vmatpush3.bf16.msra.mxu1 %v972_v34  ;;  %860 = vmatpush3.bf16.msra.mxu0 %v973_v35 }
  0x90   :  { %879 = vmatprep.subr.bf16.mxu1 %v1182_v36  ;;  %861 = vmatprep.subr.bf16.mxu0 %v1182_v36 }
  0x91   :  { %875 = vmatprep.mubr.msk.bf16.mxu0 %vm1183_vm0, %v1182_v36 }
  0x93   :  { %862 = vmatpush3.bf16.msra.mxu0 %v974_v37 }
  0x94   :  { %863 = vmatprep.subr.bf16.mxu0 %v1182_v36 }
  0x97   :  { %864 = vmatpush3.bf16.msra.mxu0 %v975_v38 }
  0x98   :  { %865 = vmatprep.subr.bf16.mxu0 %v1182_v36 }
  0x9b   :  { %866 = vmatpush3.bf16.msra.mxu0 %v976_v39 }
  0x9c   :  { %867 = vmatprep.subr.bf16.mxu0 %v1182_v36 }
  0x9f   :  { %868 = vmatpush3.bf16.msra.mxu0 %v977_v48 }
  0xa0   :  { %869 = vmatprep.subr.bf16.mxu0 %v1182_v36 }
  0xa3   :  { %870 = vmatpush3.bf16.msra.mxu0 %v978_v49 }
  0xa4   :  { %871 = vmatprep.subr.bf16.mxu0 %v1182_v36 }
  0xa7   :  { %872 = vmatpush3.bf16.msra.mxu0 %v979_v50 }
  0xa8   :  { %873 = vmatprep.subr.bf16.mxu0 %v1182_v36 }
  0xab   :  { %874 = vmatpush3.bf16.msra.mxu0 %v980_v51 }
  0xac   :  { %899 = vmatprep.subr.bf16.mxu0 %v1182_v36 }
 0x161   :  { %v237_v40 = vpop.f32.mrb[0].mxu0 }
 0x162   :  { %997 = vtanh.f32 %v237_v40  ;;  %v239_v41 = vpop.f32.mrb[1].mxu0 }
 0x163   :  { %999 = vtanh.f32 %v239_v41  ;;  %v241_v42 = vpop.f32.mrb[2].mxu0 }
 0x164   :  { %v242_v43 = vpop.f32.mrb[3].mxu0 }
 0x16c   :  { %v998_v44 = vpop.eup %997 }
 0x16d   :  { %v1000_v45 = vpop.eup %999  ;;  %v246_v47 = vpack.c.bf16 %v998_v44, %v998_v44 }
 0x16e   :  { %v247_v46 = vpack.c.bf16 %v1000_v45, %v1000_v45 }
 0x170   :  { %408 = vmatprep.mubr.bf16.mxu1 %v247_v46 }
 0x171   :  { %409 = vmatmul.mubr.bf16.vlgmr.msra.gmra.mrb[0].mxu1 %v246_v47 }
 0x172   :  { %895 = vmatprep.mubr.msk.bf16.mxu1 %vm1183_vm0, %v1182_v36  ;;  %880 = vmatpush3.bf16.msra.mxu1 %v981_v52 }
 0x173   :  { %881 = vmatprep.subr.bf16.mxu1 %v1182_v36 }
 0x176   :  { %882 = vmatpush3.bf16.msra.mxu1 %v982_v53 }
 0x177   :  { %883 = vmatprep.subr.bf16.mxu1 %v1182_v36 }
 0x17a   :  { %884 = vmatpush3.bf16.msra.mxu1 %v983_v54 }
 0x17b   :  { %885 = vmatprep.subr.bf16.mxu1 %v1182_v36 }
 0x17e   :  { %886 = vmatpush3.bf16.msra.mxu1 %v984_v55 }
 0x17f   :  { %887 = vmatprep.subr.bf16.mxu1 %v1182_v36 }
 0x182   :  { %888 = vmatpush3.bf16.msra.mxu1 %v985_v56 }
 0x183   :  { %889 = vmatprep.subr.bf16.mxu1 %v1182_v36 }
 0x186   :  { %890 = vmatpush3.bf16.msra.mxu1 %v986_v0 }
 0x187   :  { %891 = vmatprep.subr.bf16.mxu1 %v1182_v36 }
 0x18a   :  { %892 = vmatpush3.bf16.msra.mxu1 %v987_v1 }
 0x18b   :  { %893 = vmatprep.subr.bf16.mxu1 %v1182_v36 }
 0x18e   :  { %894 = vmatpush3.bf16.msra.mxu1 %v988_v2 }
 0x244   :  { %v826_v57 = vpop.f32.mrb[0].mxu1 }
 0x245   :  { %v827_v58 = vpop.f32.mrb[1].mxu1 }
 0x246   :  { %v828_v59 = vadd.f32 %v827_v58, %v826_v57  ;;  %v829_v60 = vpop.f32.mrb[2].mxu1 }
 0x247   :  { %v830_v61 = vpop.f32.mrb[3].mxu1 }
 0x248   :  { %1001 = vtanh.f32 %v828_v59 }
 0x252   :  { %v1002_v62 = vpop.eup %1001 }
 0x253   :  { %v417_v63 = vpack.c.bf16 %v1002_v62, %v1002_v62 }
 0x255   :  { %876 = vmatmul.mubr.bf16.vlgmr.msra.gmra.mrb[4].mxu0 %v417_v63 }
 0x256   :  { %915 = vmatprep.mubr.msk.bf16.mxu0 %vm1183_vm0, %v1182_v36  ;;  %900 = vmatpush3.bf16.msra.mxu0 %v989_v3 }
 0x257   :  { %901 = vmatprep.subr.bf16.mxu0 %v1182_v36 }
 0x25a   :  { %902 = vmatpush3.bf16.msra.mxu0 %v990_v4 }
 0x25b   :  { %903 = vmatprep.subr.bf16.mxu0 %v1182_v36 }
 0x25e   :  { %904 = vmatpush3.bf16.msra.mxu0 %v991_v5 }
 0x25f   :  { %905 = vmatprep.subr.bf16.mxu0 %v1182_v36 }
 0x262   :  { %906 = vmatpush3.bf16.msra.mxu0 %v992_v6 }
 0x263   :  { %907 = vmatprep.subr.bf16.mxu0 %v1182_v36 }
 0x266   :  { %908 = vmatpush3.bf16.msra.mxu0 %v993_v7 }
 0x267   :  { %909 = vmatprep.subr.bf16.mxu0 %v1182_v36 }
 0x26a   :  { %910 = vmatpush3.bf16.msra.mxu0 %v994_v14 }
 0x26b   :  { %911 = vmatprep.subr.bf16.mxu0 %v1182_v36 }
 0x26e   :  { %912 = vmatpush3.bf16.msra.mxu0 %v995_v15 }
 0x26f   :  { %913 = vmatprep.subr.bf16.mxu0 %v1182_v36 }
 0x272   :  { %914 = vmatpush3.bf16.msra.mxu0 %v996_v16 }
 0x328   :  { %v516_v8 = vpop.f32.mrb[4].mxu0 }
 0x329   :  { %1003 = vtanh.f32 %v516_v8  ;;  %v877_v9 = vpop.f32.mrb[5].mxu0 }
 0x32a   :  { %v519_v10 = vpop.f32.mrb[6].mxu0 }
 0x32b   :  { %v878_v11 = vpop.f32.mrb[7].mxu0 }
 0x333   :  { %v1004_v12 = vpop.eup %1003 }
 0x334   :  { %v523_v13 = vpack.c.bf16 %v1004_v12, %v1004_v12 }
 0x336   :  { %896 = vmatmul.mubr.bf16.vlgmr.msra.gmra.mrb[4].mxu1 %v523_v13 }
 0x409   :  { %v622_v17 = vpop.f32.mrb[4].mxu1 }
 0x40a   :  { %1005 = vtanh.f32 %v622_v17  ;;  %v897_v18 = vpop.f32.mrb[5].mxu1 }
 0x40b   :  { %v625_v19 = vpop.f32.mrb[6].mxu1 }
 0x40c   :  { %v898_v20 = vpop.f32.mrb[7].mxu1 }
 0x414   :  { %v1006_v21 = vpop.eup %1005 }
 0x415   :  { %v629_v22 = vpack.c.bf16 %v1006_v21, %v1006_v21 }
 0x417   :  { %916 = vmatmul.mubr.bf16.vlgmr.msra.gmra.mrb[8].mxu0 %v629_v22 }
 0x4ea   :  { %v728_v23 = vpop.f32.mrb[8].mxu0 }
 0x4eb   :  { %v734_v24 = vpack.c.bf16 %v728_v23, %v728_v23  ;;  %v917_v25 = vpop.f32.mrb[9].mxu0 }
 0x4ec   :  { %v731_v26 = vpop.f32.mrb[10].mxu0 }
 0x4ed   :  { %735 = vst [vmem:[#allocation13] sm:$0x1] %v734_v24  ;;  %v918_v27 = vpop.f32.mrb[11].mxu0 }
 0x4ee   :  { %1150 = shalt.err (!%p1147_p10)
}
 0x4ef   :  { %s1151_s14 = scalar_lea.hbm %s1352_s6, 16 }
 0x4f0   :  { %p1152_p11 = scmp.ne.s32.totalorder %s1352_s6, %s1151_s14  ;;  %p1155_p12 = scmp.lt.u32.totalorder %s1151_s14, %s1352_s6 }
 0x4f2   :  { %p1157_p13 = pnand %p1155_p12, %p1152_p11 }
 0x4f4   :  { %1160 = shalt.err (!%p1157_p13)
}
 0x4f5   :  { %745 = dma.vmem_to_hbm [thread:$0]  %s743_s22, 16, %s1352_s6, [#allocation4]  }
 0x4f6   :  { %1169 = dma.done.wait [#allocation4], 16  }
 0x4f7   :  { %1170 = vsyncadd [#allocation4], 4294967280 }
 0x4f8   :  { %749 = vsyncpa [#allocation3], 1 }
 0x4f9   :  { %750 = vsyncpa [#allocation6], 1 }
 0x4fa   :  { %751 = vsyncpa [#allocation9], 1 }
 0x4fb   :  { %752 = vsyncpa [#allocation12], 1 }
 0x4fc   :  { %753 = vsyncpa [#allocation4], 1 }

</bundles_post_ra>
